<compile_context>
chip_gen: v7x
topology: tpu7x:2x2x1
jax: 0.10.0
libtpu: 0.0.40
codegen_flags: <defaults>
</compile_context>

<pallas_src>
import jax
import jax.numpy as jnp
from jax.experimental import pallas as pl
from jax.experimental.pallas import tpu as pltpu

INPUT_SIZE = 10
HIDDEN_SIZE = 32
OUTPUT_SIZE = 3
OUT_PAD = 8            # padded output width (== full last dim of the output array)
NEG_BIG = -1e30        # padded-logit bias -> exp() underflows to exactly 0 in f32


def _round_up(x, m):
    return ((x + m - 1) // m) * m


def mlp_softmax_kernel(x_ref, w1_ref, b1_ref, w2_ref, b2_ref, o_ref):
    # fc1 (bf16 MXU operands, f32 accumulate) + bias + ReLU in f32
    x = x_ref[...]                                                  # [TB, I] bf16
    h = jnp.dot(x, w1_ref[...], preferred_element_type=jnp.float32)
    h = jnp.maximum(h + b1_ref[...], 0.0)                           # [TB, H] f32

    # fc2 (bf16 MXU, f32 accumulate) + padded bias -> [TB, OUT_PAD]
    logits = jnp.dot(h.astype(jnp.bfloat16), w2_ref[...],
                     preferred_element_type=jnp.float32)
    logits = logits + b2_ref[...]                                   # pad lanes = -1e30

    # numerically stable softmax over the feature axis (padded lanes contribute 0)
    m = jnp.max(logits, axis=-1, keepdims=True)
    e = jnp.exp(logits - m)
    denom = jnp.sum(e, axis=-1, keepdims=True)
    o_ref[...] = (e / denom).astype(o_ref.dtype)                    # exact normalization


def zeronex_forward(x, w1, b1, w2p, b2p, *, block_batch=1024):
    """x:[B, INPUT] (any float dtype), w1:[INPUT, HIDDEN] bf16, b1:[1, HIDDEN] f32,
    w2p:[HIDDEN, OUT_PAD] bf16, b2p:[1, OUT_PAD] f32 -> softmax probs [B, OUTPUT]."""
    batch = x.shape[0]
    x = x.astype(jnp.bfloat16)   # halve input HBM read; matmul operands are bf16 anyway

    # Batch tile: large enough to pipeline, >=2 grid steps for mid/large batches
    # (so v7x's two TensorCores both get work), clamped for tiny demo batches.
    tb = min(block_batch, _round_up(-(-batch // 2), 8))
    tb = max(8, min(tb, _round_up(batch, 8)))
    grid = (pl.cdiv(batch, tb),)

    out = pl.pallas_call(
        mlp_softmax_kernel,
        out_shape=jax.ShapeDtypeStruct((batch, OUT_PAD), jnp.float32),
        grid=grid,
        in_specs=[
            pl.BlockSpec((tb, INPUT_SIZE), lambda i: (i, 0)),           # x: tiled
            pl.BlockSpec((INPUT_SIZE, HIDDEN_SIZE), lambda i: (0, 0)),  # w1: resident
            pl.BlockSpec((1, HIDDEN_SIZE), lambda i: (0, 0)),           # b1: resident
            pl.BlockSpec((HIDDEN_SIZE, OUT_PAD), lambda i: (0, 0)),     # w2p: resident
            pl.BlockSpec((1, OUT_PAD), lambda i: (0, 0)),               # b2p: resident
        ],
        out_specs=pl.BlockSpec((tb, OUT_PAD), lambda i: (i, 0)),
        compiler_params=pltpu.CompilerParams(
            dimension_semantics=("parallel",),        # shard batch tiles on v7x 2-TC
            vmem_limit_bytes=32 * 1024 * 1024,        # explicit budget (v5e/v7x-safe)
        ),
    )(x, w1, b1, w2p, b2p)

    # Narrow (32 B/row -> 12 B/row) slice back to the real class count.
    return out[:, :OUTPUT_SIZE]


def init_params(key):
    # PyTorch nn.Linear default init: U(-1/sqrt(fan_in), 1/sqrt(fan_in)).
    # Weights stored transposed ([in, out]) and cast to bf16 for the MXU; biases f32.
    # fc2 padding to OUT_PAD is done ONCE here (zero weight cols + -1e30 bias cols).
    k1, k2, k3, k4 = jax.random.split(key, 4)
    bound1 = 1.0 / jnp.sqrt(float(INPUT_SIZE))
    bound2 = 1.0 / jnp.sqrt(float(HIDDEN_SIZE))
    w1 = jax.random.uniform(k1, (INPUT_SIZE, HIDDEN_SIZE), jnp.float32, -bound1, bound1)
    b1 = jax.random.uniform(k2, (1, HIDDEN_SIZE), jnp.float32, -bound1, bound1)
    w2 = jax.random.uniform(k3, (HIDDEN_SIZE, OUTPUT_SIZE), jnp.float32, -bound2, bound2)
    b2 = jax.random.uniform(k4, (1, OUTPUT_SIZE), jnp.float32, -bound2, bound2)

    w2p = jnp.zeros((HIDDEN_SIZE, OUT_PAD), jnp.float32).at[:, :OUTPUT_SIZE].set(w2)
    b2p = jnp.full((1, OUT_PAD), NEG_BIG, jnp.float32).at[:, :OUTPUT_SIZE].set(b2)

    return (w1.astype(jnp.bfloat16), b1,
            w2p.astype(jnp.bfloat16), b2p,
            w2.astype(jnp.bfloat16), b2)  # unpadded copies for the reference check


if __name__ == "__main__":
    key = jax.random.PRNGKey(0)
    pkey, xkey = jax.random.split(key)
    w1, b1, w2p, b2p, w2, b2 = init_params(pkey)

    batch = 8
    x = jax.random.normal(xkey, (batch, INPUT_SIZE), jnp.float32)

    out = zeronex_forward(x, w1, b1, w2p, b2p)
    out = jax.block_until_ready(out)

    # Reference check in plain JAX with the same bf16 operands / f32 accumulation.
    xb = x.astype(jnp.bfloat16)
    h_ref = jnp.maximum(
        jnp.dot(xb, w1, preferred_element_type=jnp.float32) + b1, 0.0)
    logits_ref = jnp.dot(h_ref.astype(jnp.bfloat16), w2,
                         preferred_element_type=jnp.float32) + b2
    ref = jax.nn.softmax(logits_ref, axis=1)

    assert out.shape == (batch, OUTPUT_SIZE)
    assert jnp.allclose(out, ref, atol=1e-3, rtol=1e-3)
    assert jnp.allclose(jnp.sum(out, axis=1), 1.0, atol=1e-4)

    print("KERNEL_OK")
</pallas_src>

<mosaic_0001>
module attributes {stable_mosaic.version = 11 : i64} {
  func.func @mlp_softmax_kernel(%arg0: i32, %arg1: memref<8x10xbf16, #tpu.memory_space<vmem>>, %arg2: memref<10x32xbf16, #tpu.memory_space<vmem>>, %arg3: memref<1x32xf32, #tpu.memory_space<vmem>>, %arg4: memref<32x8xbf16, #tpu.memory_space<vmem>>, %arg5: memref<1x8xf32, #tpu.memory_space<vmem>>, %arg6: memref<8x8xf32, #tpu.memory_space<vmem>>) attributes {dimension_semantics = [#tpu.dimension_semantics<parallel>], iteration_bounds = array<i64: 1>, scalar_prefetch = 0 : i64, scratch_operands = 0 : i64, tpu.core_type = #tpu.core_type<tc>, window_params = [{transform_indices = @transform_0, window_bounds = array<i64: 8, 10>}, {pipeline_mode = #tpu.pipeline_mode<synchronous>, transform_indices = @transform_1, window_bounds = array<i64: 10, 32>}, {pipeline_mode = #tpu.pipeline_mode<synchronous>, transform_indices = @transform_2, window_bounds = array<i64: 1, 32>}, {pipeline_mode = #tpu.pipeline_mode<synchronous>, transform_indices = @transform_3, window_bounds = array<i64: 32, 8>}, {pipeline_mode = #tpu.pipeline_mode<synchronous>, transform_indices = @transform_4, window_bounds = array<i64: 1, 8>}, {transform_indices = @transform_5, window_bounds = array<i64: 8, 8>}]} {
    %c0 = arith.constant 0 : index
    %c0_0 = arith.constant 0 : index
    %0 = vector.load %arg1[%c0, %c0_0] : memref<8x10xbf16, #tpu.memory_space<vmem>>, vector<8x10xbf16>
    %c0_1 = arith.constant 0 : index
    %c0_2 = arith.constant 0 : index
    %1 = vector.load %arg2[%c0_1, %c0_2] : memref<10x32xbf16, #tpu.memory_space<vmem>>, vector<10x32xbf16>
    %cst = arith.constant dense<0.000000e+00> : vector<8x32xf32>
    %2 = tpu.matmul %0, %1, %cst {dimension_numbers = #tpu.dot_dimension_numbers<[1], [0], [0], [1], [0, 0, 1, 1], [], []>} : vector<8x10xbf16>, vector<10x32xbf16>, vector<8x32xf32> -> vector<8x32xf32>
    %c0_3 = arith.constant 0 : index
    %c0_4 = arith.constant 0 : index
    %3 = vector.load %arg3[%c0_3, %c0_4] : memref<1x32xf32, #tpu.memory_space<vmem>>, vector<1x32xf32>
    %4 = vector.broadcast %3 : vector<1x32xf32> to vector<8x32xf32>
    %5 = arith.addf %2, %4 : vector<8x32xf32>
    %cst_5 = arith.constant 0.000000e+00 : f32
    %6 = vector.broadcast %cst_5 : f32 to vector<8x32xf32>
    %7 = arith.maximumf %5, %6 : vector<8x32xf32>
    %8 = arith.truncf %7 : vector<8x32xf32> to vector<8x32xbf16>
    %c0_6 = arith.constant 0 : index
    %c0_7 = arith.constant 0 : index
    %9 = vector.load %arg4[%c0_6, %c0_7] : memref<32x8xbf16, #tpu.memory_space<vmem>>, vector<32x8xbf16>
    %cst_8 = arith.constant dense<0.000000e+00> : vector<8x8xf32>
    %10 = tpu.matmul %8, %9, %cst_8 {dimension_numbers = #tpu.dot_dimension_numbers<[1], [0], [0], [1], [0, 0, 1, 1], [], []>} : vector<8x32xbf16>, vector<32x8xbf16>, vector<8x8xf32> -> vector<8x8xf32>
    %c0_9 = arith.constant 0 : index
    %c0_10 = arith.constant 0 : index
    %11 = vector.load %arg5[%c0_9, %c0_10] : memref<1x8xf32, #tpu.memory_space<vmem>>, vector<1x8xf32>
    %12 = vector.broadcast %11 : vector<1x8xf32> to vector<8x8xf32>
    %13 = arith.addf %10, %12 : vector<8x8xf32>
    %cst_11 = arith.constant dense<0xFF800000> : vector<8xf32>
    %14 = vector.multi_reduction <maximumf>, %13, %cst_11 [1] : vector<8x8xf32> to vector<8xf32>
    %15 = vector.shape_cast %14 : vector<8xf32> to vector<8x1xf32>
    %16 = vector.broadcast %15 : vector<8x1xf32> to vector<8x8xf32>
    %17 = arith.subf %13, %16 : vector<8x8xf32>
    %18 = math.exp %17 : vector<8x8xf32>
    %cst_12 = arith.constant dense<0.000000e+00> : vector<8xf32>
    %19 = vector.multi_reduction <add>, %18, %cst_12 [1] : vector<8x8xf32> to vector<8xf32>
    %20 = vector.shape_cast %19 : vector<8xf32> to vector<8x1xf32>
    %21 = vector.broadcast %20 : vector<8x1xf32> to vector<8x8xf32>
    %22 = arith.divf %18, %21 : vector<8x8xf32>
    %c0_13 = arith.constant 0 : index
    %c0_14 = arith.constant 0 : index
    %23 = vector.load %arg6[%c0_13, %c0_14] : memref<8x8xf32, #tpu.memory_space<vmem>>, vector<8x8xf32>
    tpu.vector_store %arg6[%c0_13, %c0_14], %22 {strides = array<i32>} : memref<8x8xf32, #tpu.memory_space<vmem>>, vector<8x8xf32>,
    return
  }
  func.func @transform_0(%arg0: i32) -> (i32, i32) {
    %c0_i32 = arith.constant 0 : i32
    %c0_i32_0 = arith.constant 0 : i32
    return %arg0, %c0_i32 : i32, i32
  }
  func.func @transform_1(%arg0: i32) -> (i32, i32) {
    %c0_i32 = arith.constant 0 : i32
    %c0_i32_0 = arith.constant 0 : i32
    %c0_i32_1 = arith.constant 0 : i32
    return %c0_i32, %c0_i32_0 : i32, i32
  }
  func.func @transform_2(%arg0: i32) -> (i32, i32) {
    %c0_i32 = arith.constant 0 : i32
    %c0_i32_0 = arith.constant 0 : i32
    %c0_i32_1 = arith.constant 0 : i32
    return %c0_i32, %c0_i32_0 : i32, i32
  }
  func.func @transform_3(%arg0: i32) -> (i32, i32) {
    %c0_i32 = arith.constant 0 : i32
    %c0_i32_0 = arith.constant 0 : i32
    %c0_i32_1 = arith.constant 0 : i32
    return %c0_i32, %c0_i32_0 : i32, i32
  }
  func.func @transform_4(%arg0: i32) -> (i32, i32) {
    %c0_i32 = arith.constant 0 : i32
    %c0_i32_0 = arith.constant 0 : i32
    %c0_i32_1 = arith.constant 0 : i32
    return %c0_i32, %c0_i32_0 : i32, i32
  }
  func.func @transform_5(%arg0: i32) -> (i32, i32) {
    %c0_i32 = arith.constant 0 : i32
    %c0_i32_0 = arith.constant 0 : i32
    return %arg0, %c0_i32 : i32, i32
  }
}

</mosaic_0001>

<bundles_post_ra>
// kernel: tpu_custom_call.1
= control target key start
LH: loop header
LB: loop body
LE: loop exit
PB: predicated region body
PF: predicated region fallthrough
CT: control target
= control target key end

     0   :  { %vm41_vm0 = vcmask 1044480   ;;  %v241_v0 = vmov 0.0   ;;  %vm242_vm1 = vmmov 0   ;;  %vm37_vm2 = vcmask 80896   ;;  %s307_s0 = inlined_call_operand.vmem [shape: bf16[8,10], index: 0, kind: input, shape index: {}]   ;;  %s308_s1 = inlined_call_operand.vmem [shape: bf16[10,32], index: 1, kind: input, shape index: {}]   ;;  %s309_s2 = inlined_call_operand.vmem [shape: f32[1,32], index: 2, kind: input, shape index: {}]   ;;  %s310_s3 = inlined_call_operand.vmem [shape: bf16[32,8], index: 3, kind: input, shape index: {}]   ;;  %s311_s4 = inlined_call_operand.vmem [shape: f32[1,8], index: 4, kind: input, shape index: {}]   ;;  %s312_s5 = inlined_call_operand.hbm [shape: f32[8,8], index: 5, kind: output, shape index: {}]  }
   0x1   :  { %193 = vmatprep.subr.bf16.mxu0 %v241_v0  ;;  %v210_v1 = vld [vmem:[%s308_s1] sm:$0x1f]   ;;  %199 = vmatprep.subr.bf16.mxu1 %v241_v0 }
   0x2   :  { %195 = vmatprep.mubr.msk.bf16.mxu0 %vm242_vm1, %v241_v0  ;;  %203 = vmatprep.mubr.msk.bf16.mxu1 %vm242_vm1, %v241_v0  ;;  %v43_v2 = vsel %vm41_vm0, %v210_v1, 0  ;;  %v22_v3 = vld [vmem:[%s307_s0] sm:$0xf] }
   0x3   :  { %194 = vmatpush3.bf16.msra.mxu0 %v43_v2 }
   0x4   :  { %10 = vsyncpa [#allocation3], 0  ;;  %v211_v4 = vld [vmem:[%s310_s3] sm:$0xff]   ;;  %v212_v5 = vld [vmem:[%s310_s3 + $0x8] sm:$0xff]   ;;  %vm110_vm3 = vcmask 261120   ;;  %vm154_vm4 = vcmask 64512  }
   0x5   :  { %200 = vmatpush3.bf16.msra.mxu1 %v211_v4  ;;  %v181_v6 = vld [vmem:[%s309_s2] ss:$0 sm:$0xff]  ;;  %s243_s2 = smov [#allocation2]  }
   0x6   :  { %196 = vmatmul.mubr.msk.bf16.vlgmr.msra.gmra.mrb[0].mxu0 %vm37_vm2, %v22_v3  ;;  %201 = vmatprep.subr.bf16.mxu1 %v241_v0  ;;  %v184_v14 = vld [vmem:[%s311_s4] ss:$0 sm:$0xff]  ;;  %s173_s3 = sshll.u32 %s243_s2, 4  ;;  %s174_s3 = int_to_ptr.vmem [resolvable:$true] %s173_s3 }
   0x7   :  { %s217_s4 = scalar_lea.vmem %s174_s3, 128  ;;  %p222_p1 = scmp.lt.s32.totalorder %s174_s3, %s174_s3 }
   0x8   :  { %p218_p0 = scmp.ne.s32.totalorder %s174_s3, %s217_s4  ;;  %p223_p2 = scmp.lt.s32.totalorder %s217_s4, %s217_s4 }
   0x9   :  { %202 = vmatpush3.bf16.msra.mxu1 %v212_v5 }
   0xa   :  { %p224_p3 = por %p223_p2, %p222_p1 }
   0xc   :  { %p225_p4 = pnand %p224_p3, %p218_p0 }
  0xd9   :  { %v79_v7 = vpop.f32.mrb[0].mxu0 }
  0xda   :  { %v80_v8 = vadd.f32 %v181_v6, %v79_v7  ;;  %v197_v9 = vpop.f32.mrb[1].mxu0 }
  0xdb   :  { %v82_v10 = vpop.f32.mrb[2].mxu0 }
  0xdc   :  { %v85_v11 = vmax.f32 %v80_v8, 0.0  ;;  %v198_v12 = vpop.f32.mrb[3].mxu0 }
  0xde   :  { %v86_v13 = vpack.c.bf16 %v85_v11, %v85_v11 }
  0xe0   :  { %204 = vmatmul.mubr.msk.bf16.vlgmr.msra.gmra.mrb[0].mxu1 %vm110_vm3, %v86_v13 }
 0x1b3   :  { %v148_v15 = vpop.f32.mrb[0].mxu1 }
 0x1b4   :  { %v149_v16 = vadd.f32 %v184_v14, %v148_v15  ;;  %v205_v17 = vpop.f32.mrb[1].mxu1 }
 0x1b5   :  { %v151_v18 = vpop.f32.mrb[2].mxu1 }
 0x1b6   :  { %v206_v19 = vpop.f32.mrb[3].mxu1  ;;  %v155_v20 = vsel %vm154_vm4, %v149_v16, -inf }
 0x1b7   :  { %156 = vmax.xlane.f32.xlu0 %v155_v20 }
 0x244   :  { %v157_v21 = vpop.xlane.xlu0 %156 }
 0x245   :  { %v158_v22 = vsub.f32 %v149_v16, %v157_v21 }
 0x247   :  { %v159_v23 = vmul.f32 1.442695, %v158_v22 }
 0x249   :  { %213 = vpow2.f32 %v159_v23 }
 0x253   :  { %v214_v24 = vpop.eup %213 }
 0x254   :  { %v161_v25 = vsel %vm154_vm4, %v214_v24, 0.0 }
 0x255   :  { %162 = vadd.xlane.f32.xlu0 %v161_v25 }
 0x2e2   :  { %v163_v26 = vpop.xlane.xlu0 %162 }
 0x2e3   :  { %215 = vrcp.f32 %v163_v26 }
 0x2ed   :  { %v216_v27 = vpop.eup %215 }
 0x2ee   :  { %v165_v28 = vmul.f32 %v216_v27, %v214_v24 }
 0x2f0   :  { %166 = vst.msk [vmem:[#allocation2] sm:$0xff] %vm154_vm4, %v165_v28 }
 0x2f1   :  { %228 = shalt.err (!%p225_p4)
}
 0x2f2   :  { %s229_s30 = scalar_lea.hbm %s312_s5, 128 }
 0x2f3   :  { %p230_p5 = scmp.ne.s32.totalorder %s312_s5, %s229_s30  ;;  %p233_p6 = scmp.lt.u32.totalorder %s229_s30, %s312_s5 }
 0x2f5   :  { %p235_p7 = pnand %p233_p6, %p230_p5 }
 0x2f7   :  { %238 = shalt.err (!%p235_p7)
}
 0x2f8   :  { %176 = dma.vmem_to_hbm [thread:$0]  %s174_s3, 128, %s312_s5, [#allocation3]  }
 0x2f9   :  { %239 = dma.done.wait [#allocation3], 128  }
 0x2fa   :  { %240 = vsyncadd [#allocation3], 4294967168 }
 0x2fb   :  { %180 = vsyncpa [#allocation3], 1 }

</bundles_post_ra>
